<compile_context>
chip_gen: v6e
topology: v6e:2x2x1
jax: 0.10.0
libtpu: 0.0.40
codegen_flags: <defaults>
</compile_context>

<pallas_src>
import functools

import jax
import jax.numpy as jnp
from jax.experimental import pallas as pl
from jax.experimental.pallas import tpu as pltpu


# --------------------------- generation-aware VMEM ---------------------------

def _vmem_limit_bytes():
    """~5/8 of this generation's per-core VMEM, capped at 100 MiB."""
    try:
        cap = int(pltpu.get_tpu_info().vmem_capacity_bytes)
    except Exception:
        return 40 * 1024 * 1024            # safe on every generation
    return min(int(cap * 5) // 8, 100 * 1024 * 1024)


# ------------------------- fused decoder-layer kernel ------------------------

def _gemma_layer_kernel(x_ref, cs_ref, m_ref, g1_ref, wqkv_ref, bqkv_ref,
                        wo_ref, bo_ref, g2_ref, wg_ref, bg_ref, wu_ref,
                        bu_ref, wd_ref, bd_ref, o_ref, pv_scr, *,
                        num_heads, head_dim, dq, dk, scale, eps):
    x = x_ref[...]                                   # (S, H) f32 residual
    # ---- input RMSNorm (f32 stats, rsqrt -> EUP) ----
    ms = jnp.mean(x * x, axis=-1, keepdims=True)
    n = (g1_ref[...] * (x * jax.lax.rsqrt(ms + eps))).astype(jnp.bfloat16)

    # ---- fused QKV projection: ONE MXU call against [Wq | Wk | Wv] ----
    qkv = jnp.dot(n, wqkv_ref[...],
                  preferred_element_type=jnp.float32) + bqkv_ref[...]

    # ---- flat rotate_half RoPE (reference semantics, num_heads == 2) ----
    # With 2 heads, the rotate_half halves ARE the per-head slices the
    # attention loop needs, so the rotation is pure elementwise VPU math:
    #   head0 = cos*x1 - sin*x2 ,  head1 = sin*x1 + cos*x2
    cos = cs_ref[:, :head_dim]                       # (S, HD)
    sin = cs_ref[:, head_dim:]
    half = dq // 2                                   # == head_dim (asserted)
    q1, q2 = qkv[:, :half], qkv[:, half:dq]
    k1, k2 = qkv[:, dq:dq + half], qkv[:, dq + half:dq + dk]
    q_heads = (cos * q1 - sin * q2, sin * q1 + cos * q2)
    k_heads = (cos * k1 - sin * k2, sin * k1 + cos * k2)
    v_off = dq + dk
    v_heads = tuple(qkv[:, v_off + h * head_dim: v_off + (h + 1) * head_dim]
                    for h in range(num_heads))

    mask = m_ref[...]                                # (1, S) additive key mask

    # ---- attention: per-head softmax, PV into VMEM scratch ----
    for h in range(num_heads):                       # static unroll (2 heads)
        qh = q_heads[h].astype(jnp.bfloat16)
        kh = k_heads[h].astype(jnp.bfloat16)
        vh = v_heads[h].astype(jnp.bfloat16)
        s = jax.lax.dot_general(qh, kh, (((1,), (1,)), ((), ())),
                                preferred_element_type=jnp.float32) * scale
        s = s + mask                                 # broadcast over queries
        s = s - jnp.max(s, axis=-1, keepdims=True)
        p = jnp.exp(s)
        p = p * pl.reciprocal(jnp.sum(p, axis=-1, keepdims=True), approx=True)
        pv_scr[:, h * head_dim:(h + 1) * head_dim] = jnp.dot(
            p.astype(jnp.bfloat16), vh, preferred_element_type=jnp.float32)

    # ---- ONE fat o_proj matmul over all heads ----
    attn = jnp.dot(pv_scr[...].astype(jnp.bfloat16), wo_ref[...],
                   preferred_element_type=jnp.float32) + bo_ref[...]

    # ---- residual add, post-attention RMSNorm on the residual stream ----
    y = x + attn
    ms2 = jnp.mean(y * y, axis=-1, keepdims=True)
    h2 = g2_ref[...] * (y * jax.lax.rsqrt(ms2 + eps))     # f32
    h2b = h2.astype(jnp.bfloat16)

    # ---- MLP: gate (HxH), up (HxI), gelu_tanh(gate) * up, down (IxH) ----
    gate = jnp.dot(h2b, wg_ref[...],
                   preferred_element_type=jnp.float32) + bg_ref[...]
    up = jnp.dot(h2b, wu_ref[...],
                 preferred_element_type=jnp.float32) + bu_ref[...]
    hmid = (jax.nn.gelu(gate, approximate=True) * up).astype(jnp.bfloat16)
    down = jnp.dot(hmid, wd_ref[...],
                   preferred_element_type=jnp.float32) + bd_ref[...]

    # Reference forward: out = h2 + mlp(h2)  (MLP residual uses POST-norm h2)
    o_ref[...] = (h2 + down).astype(o_ref.dtype)


# --------------------------------- wrapper -----------------------------------

def gemma_decoder_layer(params, hidden_states, attention_mask, position_ids,
                        cfg):
    B, S, H = hidden_states.shape
    NH, NKV, HD = cfg["num_heads"], cfg["num_kv_heads"], cfg["head_dim"]
    I = cfg["intermediate_size"]
    eps = cfg["eps"]
    Dq, Dk, Dv = NH * HD, NKV * HD, NKV * HD
    D = Dq + Dk + Dv

    # reference constraints (flat rotate_half broadcast / gelu(gate)*up product)
    assert NH == 2 and NKV == 2, "reference flat rotate_half requires 2 heads"
    assert I == H, "reference MLP (gelu(gate[H]) * up[I]) requires I == H"
    assert S % 8 == 0, "sequence length must be a multiple of 8 (sublane tile)"

    M = B * S
    x2d = hidden_states.astype(jnp.float32).reshape(M, H)

    # rotary tables (tiny glue): freqs = pos * inv_freq, emb = cat(f, f)
    inv_freq = 1.0 / (cfg["rope_theta"] **
                      (jnp.arange(0, HD, 2, dtype=jnp.float32) / HD))
    freqs = position_ids.astype(jnp.float32)[:, :, None] * inv_freq[None, None, :]
    emb = jnp.concatenate([freqs, freqs], axis=-1)                 # (B, S, HD)
    # cos | sin packed into ONE lane-dense (M, 2*HD) input stream
    cs2d = jnp.concatenate([jnp.cos(emb), jnp.sin(emb)],
                           axis=-1).reshape(M, 2 * HD)

    mask3 = attention_mask.astype(jnp.float32).reshape(B, 1, S)

    scale = 1.0 / (HD ** 0.5)
    kern = functools.partial(_gemma_layer_kernel, num_heads=NH, head_dim=HD,
                             dq=Dq, dk=Dk, scale=scale, eps=eps)

    tok = lambda b: (b, 0)          # per-batch token blocks
    const = lambda b: (0, 0)        # weights stay resident across grid steps

    out = pl.pallas_call(
        kern,
        grid=(B,),
        out_shape=jax.ShapeDtypeStruct((M, H), jnp.float32),
        in_specs=[
            pl.BlockSpec((S, H), tok),                      # residual stream
            pl.BlockSpec((S, 2 * HD), tok),                 # packed cos|sin
            pl.BlockSpec((None, 1, S), lambda b: (b, 0, 0)),  # additive key mask
            pl.BlockSpec((1, H), const),                    # input-norm scale
            pl.BlockSpec((H, D), const),                    # fused Wqkv
            pl.BlockSpec((1, D), const),                    # fused bqkv
            pl.BlockSpec((Dv, H), const),                   # Wo
            pl.BlockSpec((1, H), const),                    # bo
            pl.BlockSpec((1, H), const),                    # post-norm scale
            pl.BlockSpec((H, H), const),                    # Wg
            pl.BlockSpec((1, H), const),                    # bg
            pl.BlockSpec((H, I), const),                    # Wu
            pl.BlockSpec((1, I), const),                    # bu
            pl.BlockSpec((I, H), const),                    # Wd
            pl.BlockSpec((1, H), const),                    # bd
        ],
        out_specs=pl.BlockSpec((S, H), tok),
        scratch_shapes=[pltpu.VMEM((S, Dv), jnp.float32)],  # per-head PV slab
        compiler_params=pltpu.CompilerParams(
            dimension_semantics=("parallel",),
            vmem_limit_bytes=_vmem_limit_bytes()),
    )(x2d, cs2d, mask3,
      params["in_norm"].reshape(1, H),
      params["wqkv"], params["bqkv"].reshape(1, D),
      params["wo"], params["bo"].reshape(1, H),
      params["post_norm"].reshape(1, H),
      params["wg"], params["bg"].reshape(1, H),
      params["wu"], params["bu"].reshape(1, I),
      params["wd"], params["bd"].reshape(1, H))
    return out.reshape(B, S, H)


# ----------------------------- parameter setup -------------------------------

def init_layer_params(key, cfg):
    H = cfg["hidden_size"]
    I = cfg["intermediate_size"]
    NH, NKV, HD = cfg["num_heads"], cfg["num_kv_heads"], cfg["head_dim"]

    def normal(k, shape, scale=0.02):
        return scale * jax.random.normal(k, shape, jnp.float32)

    ks = jax.random.split(key, 14)
    # weights stored transposed (in_features, out_features); bf16 for the MXU.
    wq = normal(ks[0], (H, NH * HD))
    bq = normal(ks[1], (NH * HD,))
    wk = normal(ks[2], (H, NKV * HD))
    bk = normal(ks[3], (NKV * HD,))
    wv = normal(ks[4], (H, NKV * HD))
    bv = normal(ks[5], (NKV * HD,))
    return {
        "in_norm": jnp.ones((H,), jnp.float32),
        "post_norm": jnp.ones((H,), jnp.float32),
        "wqkv": jnp.concatenate([wq, wk, wv], axis=1).astype(jnp.bfloat16),
        "bqkv": jnp.concatenate([bq, bk, bv], axis=0),
        "wo": normal(ks[6], (NKV * HD, H)).astype(jnp.bfloat16),
        "bo": normal(ks[7], (H,)),
        "wg": normal(ks[8], (H, H)).astype(jnp.bfloat16),
        "bg": normal(ks[9], (H,)),
        "wu": normal(ks[10], (H, I)).astype(jnp.bfloat16),
        "bu": normal(ks[11], (I,)),
        "wd": normal(ks[12], (I, H)).astype(jnp.bfloat16),
        "bd": normal(ks[13], (H,)),
    }


# ---------------------------------- main --------------------------------------

if __name__ == "__main__":
    cfg = dict(
        hidden_size=64,
        intermediate_size=64,   # must equal hidden (reference MLP constraint)
        num_heads=2,            # must be 2 (reference flat-RoPE constraint)
        num_kv_heads=2,
        head_dim=32,
        rope_theta=10000.0,
        eps=1e-6,
    )
    B, S = 2, 8

    root = jax.random.PRNGKey(0)
    k_params, k_x = jax.random.split(root)
    params = init_layer_params(k_params, cfg)

    hidden_states = jax.random.normal(k_x, (B, S, cfg["hidden_size"]),
                                      jnp.float32)
    position_ids = jnp.broadcast_to(jnp.arange(S, dtype=jnp.int32)[None, :],
                                    (B, S))
    # additive mask over key positions; mask out last key of batch 1
    attention_mask = jnp.zeros((B, S), jnp.float32).at[1, -1].set(-1e9)

    fwd = jax.jit(lambda p, h, m, pos: gemma_decoder_layer(p, h, m, pos, cfg))
    out = fwd(params, hidden_states, attention_mask, position_ids)
    jax.block_until_ready(out)

    assert out.shape == (B, S, cfg["hidden_size"])
    assert bool(jnp.all(jnp.isfinite(out)))
    print("KERNEL_OK")
</pallas_src>

<mosaic_0001>
module attributes {stable_mosaic.version = 11 : i64} {
  func.func @_gemma_layer_kernel(%arg0: i32, %arg1: memref<8x64xf32, #tpu.memory_space<vmem>>, %arg2: memref<8x64xf32, #tpu.memory_space<vmem>>, %arg3: memref<1x1x8xf32, #tpu.memory_space<vmem>>, %arg4: memref<1x64xf32, #tpu.memory_space<vmem>>, %arg5: memref<64x192xbf16, #tpu.memory_space<vmem>>, %arg6: memref<1x192xf32, #tpu.memory_space<vmem>>, %arg7: memref<64x64xbf16, #tpu.memory_space<vmem>>, %arg8: memref<1x64xf32, #tpu.memory_space<vmem>>, %arg9: memref<1x64xf32, #tpu.memory_space<vmem>>, %arg10: memref<64x64xbf16, #tpu.memory_space<vmem>>, %arg11: memref<1x64xf32, #tpu.memory_space<vmem>>, %arg12: memref<64x64xbf16, #tpu.memory_space<vmem>>, %arg13: memref<1x64xf32, #tpu.memory_space<vmem>>, %arg14: memref<64x64xbf16, #tpu.memory_space<vmem>>, %arg15: memref<1x64xf32, #tpu.memory_space<vmem>>, %arg16: memref<8x64xf32, #tpu.memory_space<vmem>>, %arg17: memref<8x64xf32, #tpu.memory_space<vmem>>) attributes {dimension_semantics = [#tpu.dimension_semantics<parallel>], iteration_bounds = array<i64: 2>, scalar_prefetch = 0 : i64, scratch_operands = 1 : i64, tpu.core_type = #tpu.core_type<tc>, window_params = [{transform_indices = @transform_0, window_bounds = array<i64: 8, 64>}, {transform_indices = @transform_1, window_bounds = array<i64: 8, 64>}, {transform_indices = @transform_2, window_bounds = array<i64: 1, 1, 8>}, {pipeline_mode = #tpu.pipeline_mode<synchronous>, transform_indices = @transform_3, window_bounds = array<i64: 1, 64>}, {pipeline_mode = #tpu.pipeline_mode<synchronous>, transform_indices = @transform_4, window_bounds = array<i64: 64, 192>}, {pipeline_mode = #tpu.pipeline_mode<synchronous>, transform_indices = @transform_5, window_bounds = array<i64: 1, 192>}, {pipeline_mode = #tpu.pipeline_mode<synchronous>, transform_indices = @transform_6, window_bounds = array<i64: 64, 64>}, {pipeline_mode = #tpu.pipeline_mode<synchronous>, transform_indices = @transform_7, window_bounds = array<i64: 1, 64>}, {pipeline_mode = #tpu.pipeline_mode<synchronous>, transform_indices = @transform_8, window_bounds = array<i64: 1, 64>}, {pipeline_mode = #tpu.pipeline_mode<synchronous>, transform_indices = @transform_9, window_bounds = array<i64: 64, 64>}, {pipeline_mode = #tpu.pipeline_mode<synchronous>, transform_indices = @transform_10, window_bounds = array<i64: 1, 64>}, {pipeline_mode = #tpu.pipeline_mode<synchronous>, transform_indices = @transform_11, window_bounds = array<i64: 64, 64>}, {pipeline_mode = #tpu.pipeline_mode<synchronous>, transform_indices = @transform_12, window_bounds = array<i64: 1, 64>}, {pipeline_mode = #tpu.pipeline_mode<synchronous>, transform_indices = @transform_13, window_bounds = array<i64: 64, 64>}, {pipeline_mode = #tpu.pipeline_mode<synchronous>, transform_indices = @transform_14, window_bounds = array<i64: 1, 64>}, {transform_indices = @transform_15, window_bounds = array<i64: 8, 64>}]} {
    %c0 = arith.constant 0 : index
    %c0_0 = arith.constant 0 : index
    %0 = vector.load %arg1[%c0, %c0_0] : memref<8x64xf32, #tpu.memory_space<vmem>>, vector<8x64xf32>
    %1 = arith.mulf %0, %0 : vector<8x64xf32>
    %cst = arith.constant dense<0.000000e+00> : vector<8xf32>
    %2 = vector.multi_reduction <add>, %1, %cst [1] : vector<8x64xf32> to vector<8xf32>
    %3 = vector.shape_cast %2 : vector<8xf32> to vector<8x1xf32>
    %cst_1 = arith.constant 6.400000e+01 : f32
    %4 = vector.broadcast %cst_1 : f32 to vector<8x1xf32>
    %5 = arith.divf %3, %4 : vector<8x1xf32>
    %c0_2 = arith.constant 0 : index
    %c0_3 = arith.constant 0 : index
    %6 = vector.load %arg4[%c0_2, %c0_3] : memref<1x64xf32, #tpu.memory_space<vmem>>, vector<1x64xf32>
    %cst_4 = arith.constant 9.99999997E-7 : f32
    %7 = vector.broadcast %cst_4 : f32 to vector<8x1xf32>
    %8 = arith.addf %5, %7 : vector<8x1xf32>
    %9 = math.rsqrt %8 : vector<8x1xf32>
    %10 = vector.broadcast %9 : vector<8x1xf32> to vector<8x64xf32>
    %11 = arith.mulf %0, %10 : vector<8x64xf32>
    %12 = vector.broadcast %6 : vector<1x64xf32> to vector<8x64xf32>
    %13 = arith.mulf %12, %11 : vector<8x64xf32>
    %14 = arith.truncf %13 : vector<8x64xf32> to vector<8x64xbf16>
    %c0_5 = arith.constant 0 : index
    %c0_6 = arith.constant 0 : index
    %15 = vector.load %arg5[%c0_5, %c0_6] : memref<64x192xbf16, #tpu.memory_space<vmem>>, vector<64x192xbf16>
    %cst_7 = arith.constant dense<0.000000e+00> : vector<8x192xf32>
    %16 = tpu.matmul %14, %15, %cst_7 {dimension_numbers = #tpu.dot_dimension_numbers<[1], [0], [0], [1], [0, 0, 1, 1], [], []>} : vector<8x64xbf16>, vector<64x192xbf16>, vector<8x192xf32> -> vector<8x192xf32>
    %c0_8 = arith.constant 0 : index
    %c0_9 = arith.constant 0 : index
    %17 = vector.load %arg6[%c0_8, %c0_9] : memref<1x192xf32, #tpu.memory_space<vmem>>, vector<1x192xf32>
    %18 = vector.broadcast %17 : vector<1x192xf32> to vector<8x192xf32>
    %19 = arith.addf %16, %18 : vector<8x192xf32>
    %c0_10 = arith.constant 0 : index
    %c0_11 = arith.constant 0 : index
    %20 = vector.load %arg2[%c0_10, %c0_11] : memref<8x64xf32, #tpu.memory_space<vmem>>, vector<8x32xf32>
    %c0_12 = arith.constant 0 : index
    %c32 = arith.constant 32 : index
    %21 = vector.load %arg2[%c0_12, %c32] : memref<8x64xf32, #tpu.memory_space<vmem>>, vector<8x32xf32>
    %22 = vector.extract_strided_slice %19 {offsets = [0, 0], sizes = [8, 32], strides = [1, 1]} : vector<8x192xf32> to vector<8x32xf32>
    %23 = vector.extract_strided_slice %19 {offsets = [0, 32], sizes = [8, 32], strides = [1, 1]} : vector<8x192xf32> to vector<8x32xf32>
    %24 = vector.extract_strided_slice %19 {offsets = [0, 64], sizes = [8, 32], strides = [1, 1]} : vector<8x192xf32> to vector<8x32xf32>
    %25 = vector.extract_strided_slice %19 {offsets = [0, 96], sizes = [8, 32], strides = [1, 1]} : vector<8x192xf32> to vector<8x32xf32>
    %26 = arith.mulf %20, %22 : vector<8x32xf32>
    %27 = arith.mulf %21, %23 : vector<8x32xf32>
    %28 = arith.subf %26, %27 : vector<8x32xf32>
    %29 = arith.mulf %21, %22 : vector<8x32xf32>
    %30 = arith.mulf %20, %23 : vector<8x32xf32>
    %31 = arith.addf %29, %30 : vector<8x32xf32>
    %32 = arith.mulf %20, %24 : vector<8x32xf32>
    %33 = arith.mulf %21, %25 : vector<8x32xf32>
    %34 = arith.subf %32, %33 : vector<8x32xf32>
    %35 = arith.mulf %21, %24 : vector<8x32xf32>
    %36 = arith.mulf %20, %25 : vector<8x32xf32>
    %37 = arith.addf %35, %36 : vector<8x32xf32>
    %38 = vector.extract_strided_slice %19 {offsets = [0, 128], sizes = [8, 32], strides = [1, 1]} : vector<8x192xf32> to vector<8x32xf32>
    %39 = vector.extract_strided_slice %19 {offsets = [0, 160], sizes = [8, 32], strides = [1, 1]} : vector<8x192xf32> to vector<8x32xf32>
    %c0_13 = arith.constant 0 : index
    %c0_14 = arith.constant 0 : index
    %c0_15 = arith.constant 0 : index
    %40 = vector.load %arg3[%c0_13, %c0_14, %c0_15] : memref<1x1x8xf32, #tpu.memory_space<vmem>>, vector<1x1x8xf32>
    %41 = vector.shape_cast %40 : vector<1x1x8xf32> to vector<1x8xf32>
    %42 = arith.truncf %28 : vector<8x32xf32> to vector<8x32xbf16>
    %43 = arith.truncf %34 : vector<8x32xf32> to vector<8x32xbf16>
    %44 = arith.truncf %38 : vector<8x32xf32> to vector<8x32xbf16>
    %cst_16 = arith.constant dense<0.000000e+00> : vector<8x8xf32>
    %45 = tpu.matmul %42, %43, %cst_16 {dimension_numbers = #tpu.dot_dimension_numbers<[1], [1], [0], [0], [0, 0, 1, 0], [], []>} : vector<8x32xbf16>, vector<8x32xbf16>, vector<8x8xf32> -> vector<8x8xf32>
    %cst_17 = arith.constant 0.176776692 : f32
    %46 = vector.broadcast %cst_17 : f32 to vector<8x8xf32>
    %47 = arith.mulf %45, %46 : vector<8x8xf32>
    %48 = vector.broadcast %41 : vector<1x8xf32> to vector<8x8xf32>
    %49 = arith.addf %47, %48 : vector<8x8xf32>
    %cst_18 = arith.constant dense<0xFF800000> : vector<8xf32>
    %50 = vector.multi_reduction <maximumf>, %49, %cst_18 [1] : vector<8x8xf32> to vector<8xf32>
    %51 = vector.shape_cast %50 : vector<8xf32> to vector<8x1xf32>
    %52 = vector.broadcast %51 : vector<8x1xf32> to vector<8x8xf32>
    %53 = arith.subf %49, %52 : vector<8x8xf32>
    %54 = math.exp %53 : vector<8x8xf32>
    %cst_19 = arith.constant dense<0.000000e+00> : vector<8xf32>
    %55 = vector.multi_reduction <add>, %54, %cst_19 [1] : vector<8x8xf32> to vector<8xf32>
    %56 = vector.shape_cast %55 : vector<8xf32> to vector<8x1xf32>
    %57 = tpu.reciprocal %56 {approx = true} : vector<8x1xf32> -> vector<8x1xf32>
    %58 = vector.broadcast %57 : vector<8x1xf32> to vector<8x8xf32>
    %59 = arith.mulf %54, %58 : vector<8x8xf32>
    %60 = arith.truncf %59 : vector<8x8xf32> to vector<8x8xbf16>
    %cst_20 = arith.constant dense<0.000000e+00> : vector<8x32xf32>
    %61 = tpu.matmul %60, %44, %cst_20 {dimension_numbers = #tpu.dot_dimension_numbers<[1], [0], [0], [1], [0, 0, 1, 1], [], []>} : vector<8x8xbf16>, vector<8x32xbf16>, vector<8x32xf32> -> vector<8x32xf32>
    %c0_21 = arith.constant 0 : index
    %c0_22 = arith.constant 0 : index
    %62 = vector.load %arg17[%c0_21, %c0_22] : memref<8x64xf32, #tpu.memory_space<vmem>>, vector<8x32xf32>
    tpu.vector_store %arg17[%c0_21, %c0_22], %61 {strides = array<i32>} : memref<8x64xf32, #tpu.memory_space<vmem>>, vector<8x32xf32>,
    %63 = arith.truncf %31 : vector<8x32xf32> to vector<8x32xbf16>
    %64 = arith.truncf %37 : vector<8x32xf32> to vector<8x32xbf16>
    %65 = arith.truncf %39 : vector<8x32xf32> to vector<8x32xbf16>
    %cst_23 = arith.constant dense<0.000000e+00> : vector<8x8xf32>
    %66 = tpu.matmul %63, %64, %cst_23 {dimension_numbers = #tpu.dot_dimension_numbers<[1], [1], [0], [0], [0, 0, 1, 0], [], []>} : vector<8x32xbf16>, vector<8x32xbf16>, vector<8x8xf32> -> vector<8x8xf32>
    %cst_24 = arith.constant 0.176776692 : f32
    %67 = vector.broadcast %cst_24 : f32 to vector<8x8xf32>
    %68 = arith.mulf %66, %67 : vector<8x8xf32>
    %69 = vector.broadcast %41 : vector<1x8xf32> to vector<8x8xf32>
    %70 = arith.addf %68, %69 : vector<8x8xf32>
    %cst_25 = arith.constant dense<0xFF800000> : vector<8xf32>
    %71 = vector.multi_reduction <maximumf>, %70, %cst_25 [1] : vector<8x8xf32> to vector<8xf32>
    %72 = vector.shape_cast %71 : vector<8xf32> to vector<8x1xf32>
    %73 = vector.broadcast %72 : vector<8x1xf32> to vector<8x8xf32>
    %74 = arith.subf %70, %73 : vector<8x8xf32>
    %75 = math.exp %74 : vector<8x8xf32>
    %cst_26 = arith.constant dense<0.000000e+00> : vector<8xf32>
    %76 = vector.multi_reduction <add>, %75, %cst_26 [1] : vector<8x8xf32> to vector<8xf32>
    %77 = vector.shape_cast %76 : vector<8xf32> to vector<8x1xf32>
    %78 = tpu.reciprocal %77 {approx = true} : vector<8x1xf32> -> vector<8x1xf32>
    %79 = vector.broadcast %78 : vector<8x1xf32> to vector<8x8xf32>
    %80 = arith.mulf %75, %79 : vector<8x8xf32>
    %81 = arith.truncf %80 : vector<8x8xf32> to vector<8x8xbf16>
    %cst_27 = arith.constant dense<0.000000e+00> : vector<8x32xf32>
    %82 = tpu.matmul %81, %65, %cst_27 {dimension_numbers = #tpu.dot_dimension_numbers<[1], [0], [0], [1], [0, 0, 1, 1], [], []>} : vector<8x8xbf16>, vector<8x32xbf16>, vector<8x32xf32> -> vector<8x32xf32>
    %c0_28 = arith.constant 0 : index
    %c32_29 = arith.constant 32 : index
    %83 = vector.load %arg17[%c0_28, %c32_29] : memref<8x64xf32, #tpu.memory_space<vmem>>, vector<8x32xf32>
    tpu.vector_store %arg17[%c0_28, %c32_29], %82 {strides = array<i32>} : memref<8x64xf32, #tpu.memory_space<vmem>>, vector<8x32xf32>,
    %c0_30 = arith.constant 0 : index
    %c0_31 = arith.constant 0 : index
    %84 = vector.load %arg17[%c0_30, %c0_31] : memref<8x64xf32, #tpu.memory_space<vmem>>, vector<8x64xf32>
    %85 = arith.truncf %84 : vector<8x64xf32> to vector<8x64xbf16>
    %c0_32 = arith.constant 0 : index
    %c0_33 = arith.constant 0 : index
    %86 = vector.load %arg7[%c0_32, %c0_33] : memref<64x64xbf16, #tpu.memory_space<vmem>>, vector<64x64xbf16>
    %cst_34 = arith.constant dense<0.000000e+00> : vector<8x64xf32>
    %87 = tpu.matmul %85, %86, %cst_34 {dimension_numbers = #tpu.dot_dimension_numbers<[1], [0], [0], [1], [0, 0, 1, 1], [], []>} : vector<8x64xbf16>, vector<64x64xbf16>, vector<8x64xf32> -> vector<8x64xf32>
    %c0_35 = arith.constant 0 : index
    %c0_36 = arith.constant 0 : index
    %88 = vector.load %arg8[%c0_35, %c0_36] : memref<1x64xf32, #tpu.memory_space<vmem>>, vector<1x64xf32>
    %89 = vector.broadcast %88 : vector<1x64xf32> to vector<8x64xf32>
    %90 = arith.addf %87, %89 : vector<8x64xf32>
    %91 = arith.addf %0, %90 : vector<8x64xf32>
    %92 = arith.mulf %91, %91 : vector<8x64xf32>
    %cst_37 = arith.constant dense<0.000000e+00> : vector<8xf32>
    %93 = vector.multi_reduction <add>, %92, %cst_37 [1] : vector<8x64xf32> to vector<8xf32>
    %94 = vector.shape_cast %93 : vector<8xf32> to vector<8x1xf32>
    %cst_38 = arith.constant 6.400000e+01 : f32
    %95 = vector.broadcast %cst_38 : f32 to vector<8x1xf32>
    %96 = arith.divf %94, %95 : vector<8x1xf32>
    %c0_39 = arith.constant 0 : index
    %c0_40 = arith.constant 0 : index
    %97 = vector.load %arg9[%c0_39, %c0_40] : memref<1x64xf32, #tpu.memory_space<vmem>>, vector<1x64xf32>
    %cst_41 = arith.constant 9.99999997E-7 : f32
    %98 = vector.broadcast %cst_41 : f32 to vector<8x1xf32>
    %99 = arith.addf %96, %98 : vector<8x1xf32>
    %100 = math.rsqrt %99 : vector<8x1xf32>
    %101 = vector.broadcast %100 : vector<8x1xf32> to vector<8x64xf32>
    %102 = arith.mulf %91, %101 : vector<8x64xf32>
    %103 = vector.broadcast %97 : vector<1x64xf32> to vector<8x64xf32>
    %104 = arith.mulf %103, %102 : vector<8x64xf32>
    %105 = arith.truncf %104 : vector<8x64xf32> to vector<8x64xbf16>
    %c0_42 = arith.constant 0 : index
    %c0_43 = arith.constant 0 : index
    %106 = vector.load %arg10[%c0_42, %c0_43] : memref<64x64xbf16, #tpu.memory_space<vmem>>, vector<64x64xbf16>
    %cst_44 = arith.constant dense<0.000000e+00> : vector<8x64xf32>
    %107 = tpu.matmul %105, %106, %cst_44 {dimension_numbers = #tpu.dot_dimension_numbers<[1], [0], [0], [1], [0, 0, 1, 1], [], []>} : vector<8x64xbf16>, vector<64x64xbf16>, vector<8x64xf32> -> vector<8x64xf32>
    %c0_45 = arith.constant 0 : index
    %c0_46 = arith.constant 0 : index
    %108 = vector.load %arg11[%c0_45, %c0_46] : memref<1x64xf32, #tpu.memory_space<vmem>>, vector<1x64xf32>
    %109 = vector.broadcast %108 : vector<1x64xf32> to vector<8x64xf32>
    %110 = arith.addf %107, %109 : vector<8x64xf32>
    %c0_47 = arith.constant 0 : index
    %c0_48 = arith.constant 0 : index
    %111 = vector.load %arg12[%c0_47, %c0_48] : memref<64x64xbf16, #tpu.memory_space<vmem>>, vector<64x64xbf16>
    %cst_49 = arith.constant dense<0.000000e+00> : vector<8x64xf32>
    %112 = tpu.matmul %105, %111, %cst_49 {dimension_numbers = #tpu.dot_dimension_numbers<[1], [0], [0], [1], [0, 0, 1, 1], [], []>} : vector<8x64xbf16>, vector<64x64xbf16>, vector<8x64xf32> -> vector<8x64xf32>
    %c0_50 = arith.constant 0 : index
    %c0_51 = arith.constant 0 : index
    %113 = vector.load %arg13[%c0_50, %c0_51] : memref<1x64xf32, #tpu.memory_space<vmem>>, vector<1x64xf32>
    %114 = vector.broadcast %113 : vector<1x64xf32> to vector<8x64xf32>
    %115 = arith.addf %112, %114 : vector<8x64xf32>
    %116 = arith.mulf %110, %110 : vector<8x64xf32>
    %117 = arith.mulf %110, %116 : vector<8x64xf32>
    %cst_52 = arith.constant 4.471500e-02 : f32
    %118 = vector.broadcast %cst_52 : f32 to vector<8x64xf32>
    %119 = arith.mulf %118, %117 : vector<8x64xf32>
    %120 = arith.addf %110, %119 : vector<8x64xf32>
    %cst_53 = arith.constant 0.797884583 : f32
    %121 = vector.broadcast %cst_53 : f32 to vector<8x64xf32>
    %122 = arith.mulf %121, %120 : vector<8x64xf32>
    %123 = math.tanh %122 : vector<8x64xf32>
    %cst_54 = arith.constant 1.000000e+00 : f32
    %124 = vector.broadcast %cst_54 : f32 to vector<8x64xf32>
    %125 = arith.addf %124, %123 : vector<8x64xf32>
    %cst_55 = arith.constant 5.000000e-01 : f32
    %126 = vector.broadcast %cst_55 : f32 to vector<8x64xf32>
    %127 = arith.mulf %126, %125 : vector<8x64xf32>
    %128 = arith.mulf %110, %127 : vector<8x64xf32>
    %129 = arith.mulf %128, %115 : vector<8x64xf32>
    %130 = arith.truncf %129 : vector<8x64xf32> to vector<8x64xbf16>
    %c0_56 = arith.constant 0 : index
    %c0_57 = arith.constant 0 : index
    %131 = vector.load %arg14[%c0_56, %c0_57] : memref<64x64xbf16, #tpu.memory_space<vmem>>, vector<64x64xbf16>
    %cst_58 = arith.constant dense<0.000000e+00> : vector<8x64xf32>
    %132 = tpu.matmul %130, %131, %cst_58 {dimension_numbers = #tpu.dot_dimension_numbers<[1], [0], [0], [1], [0, 0, 1, 1], [], []>} : vector<8x64xbf16>, vector<64x64xbf16>, vector<8x64xf32> -> vector<8x64xf32>
    %c0_59 = arith.constant 0 : index
    %c0_60 = arith.constant 0 : index
    %133 = vector.load %arg15[%c0_59, %c0_60] : memref<1x64xf32, #tpu.memory_space<vmem>>, vector<1x64xf32>
    %134 = vector.broadcast %133 : vector<1x64xf32> to vector<8x64xf32>
    %135 = arith.addf %132, %134 : vector<8x64xf32>
    %136 = arith.addf %104, %135 : vector<8x64xf32>
    %c0_61 = arith.constant 0 : index
    %c0_62 = arith.constant 0 : index
    %137 = vector.load %arg16[%c0_61, %c0_62] : memref<8x64xf32, #tpu.memory_space<vmem>>, vector<8x64xf32>
    tpu.vector_store %arg16[%c0_61, %c0_62], %136 {strides = array<i32>} : memref<8x64xf32, #tpu.memory_space<vmem>>, vector<8x64xf32>,
    return
  }
  func.func @transform_0(%arg0: i32) -> (i32, i32) {
    %c0_i32 = arith.constant 0 : i32
    %c0_i32_0 = arith.constant 0 : i32
    return %arg0, %c0_i32 : i32, i32
  }
  func.func @transform_1(%arg0: i32) -> (i32, i32) {
    %c0_i32 = arith.constant 0 : i32
    %c0_i32_0 = arith.constant 0 : i32
    return %arg0, %c0_i32 : i32, i32
  }
  func.func @transform_2(%arg0: i32) -> (i32, i32, i32) {
    %c0_i32 = arith.constant 0 : i32
    %c0_i32_0 = arith.constant 0 : i32
    %c0_i32_1 = arith.constant 0 : i32
    return %arg0, %c0_i32, %c0_i32_0 : i32, i32, i32
  }
  func.func @transform_3(%arg0: i32) -> (i32, i32) {
    %c0_i32 = arith.constant 0 : i32
    %c0_i32_0 = arith.constant 0 : i32
    %c0_i32_1 = arith.constant 0 : i32
    return %c0_i32, %c0_i32_0 : i32, i32
  }
  func.func @transform_4(%arg0: i32) -> (i32, i32) {
    %c0_i32 = arith.constant 0 : i32
    %c0_i32_0 = arith.constant 0 : i32
    %c0_i32_1 = arith.constant 0 : i32
    return %c0_i32, %c0_i32_0 : i32, i32
  }
  func.func @transform_5(%arg0: i32) -> (i32, i32) {
    %c0_i32 = arith.constant 0 : i32
    %c0_i32_0 = arith.constant 0 : i32
    %c0_i32_1 = arith.constant 0 : i32
    return %c0_i32, %c0_i32_0 : i32, i32
  }
  func.func @transform_6(%arg0: i32) -> (i32, i32) {
    %c0_i32 = arith.constant 0 : i32
    %c0_i32_0 = arith.constant 0 : i32
    %c0_i32_1 = arith.constant 0 : i32
    return %c0_i32, %c0_i32_0 : i32, i32
  }
  func.func @transform_7(%arg0: i32) -> (i32, i32) {
    %c0_i32 = arith.constant 0 : i32
    %c0_i32_0 = arith.constant 0 : i32
    %c0_i32_1 = arith.constant 0 : i32
    return %c0_i32, %c0_i32_0 : i32, i32
  }
  func.func @transform_8(%arg0: i32) -> (i32, i32) {
    %c0_i32 = arith.constant 0 : i32
    %c0_i32_0 = arith.constant 0 : i32
    %c0_i32_1 = arith.constant 0 : i32
    return %c0_i32, %c0_i32_0 : i32, i32
  }
  func.func @transform_9(%arg0: i32) -> (i32, i32) {
    %c0_i32 = arith.constant 0 : i32
    %c0_i32_0 = arith.constant 0 : i32
    %c0_i32_1 = arith.constant 0 : i32
    return %c0_i32, %c0_i32_0 : i32, i32
  }
  func.func @transform_10(%arg0: i32) -> (i32, i32) {
    %c0_i32 = arith.constant 0 : i32
    %c0_i32_0 = arith.constant 0 : i32
    %c0_i32_1 = arith.constant 0 : i32
    return %c0_i32, %c0_i32_0 : i32, i32
  }
  func.func @transform_11(%arg0: i32) -> (i32, i32) {
    %c0_i32 = arith.constant 0 : i32
    %c0_i32_0 = arith.constant 0 : i32
    %c0_i32_1 = arith.constant 0 : i32
    return %c0_i32, %c0_i32_0 : i32, i32
  }
  func.func @transform_12(%arg0: i32) -> (i32, i32) {
    %c0_i32 = arith.constant 0 : i32
    %c0_i32_0 = arith.constant 0 : i32
    %c0_i32_1 = arith.constant 0 : i32
    return %c0_i32, %c0_i32_0 : i32, i32
  }
  func.func @transform_13(%arg0: i32) -> (i32, i32) {
    %c0_i32 = arith.constant 0 : i32
    %c0_i32_0 = arith.constant 0 : i32
    %c0_i32_1 = arith.constant 0 : i32
    return %c0_i32, %c0_i32_0 : i32, i32
  }
  func.func @transform_14(%arg0: i32) -> (i32, i32) {
    %c0_i32 = arith.constant 0 : i32
    %c0_i32_0 = arith.constant 0 : i32
    %c0_i32_1 = arith.constant 0 : i32
    return %c0_i32, %c0_i32_0 : i32, i32
  }
  func.func @transform_15(%arg0: i32) -> (i32, i32) {
    %c0_i32 = arith.constant 0 : i32
    %c0_i32_0 = arith.constant 0 : i32
    return %arg0, %c0_i32 : i32, i32
  }
}

</mosaic_0001>

<bundles_post_ra>
// kernel: _lambda_.1
= control target key start
LH: loop header
LB: loop body
LE: loop exit
PB: predicated region body
PF: predicated region fallthrough
CT: control target
= control target key end

     0   :  { %s2752_s0 = inlined_call_operand.hbm [shape: f32[16,64], index: 0, kind: input, shape index: {}]   ;;  %s2753_s1 = inlined_call_operand.vmem [shape: f32[16,64], index: 1, kind: input, shape index: {}]   ;;  %s2754_s2 = inlined_call_operand.vmem [shape: f32[2,1,8], index: 2, kind: input, shape index: {}]   ;;  %s2755_s3 = inlined_call_operand.hbm [shape: f32[1,64], index: 3, kind: input, shape index: {}]   ;;  %s2756_s4 = inlined_call_operand.vmem [shape: bf16[64,192], index: 4, kind: input, shape index: {}]   ;;  %s2757_s5 = inlined_call_operand.hbm [shape: f32[1,192], index: 5, kind: input, shape index: {}]   ;;  %s2758_s6 = inlined_call_operand.vmem [shape: bf16[64,64], index: 6, kind: input, shape index: {}]   ;;  %s2759_s7 = inlined_call_operand.hbm [shape: f32[1,64], index: 7, kind: input, shape index: {}]   ;;  %s2760_s8 = inlined_call_operand.hbm [shape: f32[1,64], index: 8, kind: input, shape index: {}]   ;;  %s2761_s9 = inlined_call_operand.vmem [shape: bf16[64,64], index: 9, kind: input, shape index: {}]   ;;  %s2762_s10 = inlined_call_operand.hbm [shape: f32[1,64], index: 10, kind: input, shape index: {}]   ;;  %s2763_s11 = inlined_call_operand.vmem [shape: bf16[64,64], index: 11, kind: input, shape index: {}]   ;;  %s2764_s12 = inlined_call_operand.hbm [shape: f32[1,64], index: 12, kind: input, shape index: {}]   ;;  %s2765_s13 = inlined_call_operand.hbm [shape: bf16[64,64], index: 13, kind: input, shape index: {}]   ;;  %s2766_s14 = inlined_call_operand.hbm [shape: f32[1,64], index: 14, kind: input, shape index: {}]   ;;  %s2767_s15 = inlined_call_operand.hbm [shape: f32[16,64], index: 15, kind: output, shape index: {}]  }
   0x1   :  { %2774 = sst [smem:[#allocation25_spill]] %s2755_s3 }
   0x2   :  { %2775 = sst [smem:[#allocation26_spill]] %s2757_s5 }
   0x3   :  { %2776 = sst [smem:[#allocation27_spill]] %s2759_s7 }
   0x4   :  { %2777 = sst [smem:[#allocation28_spill]] %s2760_s8 }
   0x5   :  { %2778 = sst [smem:[#allocation29_spill]] %s2762_s10 }
   0x6   :  { %2779 = sst [smem:[#allocation30_spill]] %s2763_s11 }
   0x7   :  { %2780 = sst [smem:[#allocation31_spill]] %s2764_s12 }
   0x8   :  { %2781 = sst [smem:[#allocation32_spill]] %s2765_s13 }
   0x9   :  { %2782 = sst [smem:[#allocation33_spill]] %s2766_s14 }
   0xa   :  { %2783 = sst [smem:[#allocation34_spill]] %s2767_s15 }
   0xb   :  { %20 = vsyncpa [#allocation4], 0 }
   0xc   :  { %22 = vsyncpa [#allocation4 + $0x1], 0 }
   0xd   :  { %23 = vsyncpa [#allocation7], 0 }
   0xe   :  { %24 = vsyncpa [#allocation10], 0 }
   0xf   :  { %25 = vsyncpa [#allocation13], 0 }
  0x10   :  { %26 = vsyncpa [#allocation16], 0 }
  0x11   :  { %27 = vsyncpa [#allocation5], 0 }
  0x12   :  { %29 = vsyncpa [#allocation5 + $0x1], 0  ;;  %s2347_s18 = smov 0   ;;  %s2349_s19 = smov 0  }
  0x13   :  { %s2351_s20 = smov 0   ;;  %s2353_s21 = smov 0  }
  0x14 LB: > { %s2249_s22 = smov [#allocation6]   ;;  %s2368_s24 = sadd.s32 4294967295, %s2247_s21   ;;  %s2247_s21 = sphi %s2353_s21, %s2819_s21   ;;  %s2243_s20 = sphi %s2351_s20, %s2818_s20   ;;  %s2239_s19 = sphi %s2349_s19, %s2817_s19   ;;  %s2235_s18 = sphi %s2347_s18, %s2816_s18  }
  0x15   : > { %s409_s23 = sshll.u32 %s2249_s22, 4  ;;  %p1586_p0 = scmp.ge.s32.totalorder %s2247_s21, 1  ;;  %s410_s23 = int_to_ptr.vmem [resolvable:$true] %s409_s23 }
  0x16   : > { %p2770_p1 = scmp.eq.s32.totalorder %s2368_s24, 0  ;;  %p396_p2 = scmp.lt.s32.totalorder %s2247_s21, 3 }
  0x17   : > { %s2250_s26 = smov [#allocation9]   ;;  %s2251_s28 = smov [#allocation12]  }
  0x18   : > { %p2373_p3 = pnand %p1586_p0, %p396_p2  ;;  %s437_s27 = sshll.u32 %s2250_s26, 4  ;;  %s2380_s27 = int_to_ptr.vmem [resolvable:$true] %s437_s27 }
  0x19   : > { %s462_s29 = sshll.u32 %s2251_s28, 4  ;;  %s2252_s16 = smov [#allocation15]   ;;  %s2388_s29 = int_to_ptr.vmem [resolvable:$true] %s462_s29 }
  0x1a   : > { %s2784_s25 = scalar_select %p2373_p3, 1, 0 }
  0x1b   : > { %p1790_p5 = pneg %p2373_p3  ;;  %s2390_s17 = sshll.u32 %s2252_s16, 4  ;;  %s487_s17 = int_to_ptr.vmem [resolvable:$true] %s2390_s17 }
  0x1c   : > { %s1942_s26 = scalar_lea.vmem %s410_s23, 16  ;;  %s1949_s28 = scalar_lea.vmem %s410_s23, 32 }
  0x1d   : > { %p2384_p6 = pnand %p1790_p5, %p2770_p1  ;;  %p1943_p8 = scmp.ne.s32.totalorder %s410_s23, %s1942_s26 }
  0x1e   : > { %p1950_p11 = scmp.lt.s32.totalorder %s410_s23, %s410_s23  ;;  %p1951_p12 = scmp.lt.s32.totalorder %s1949_s28, %s1942_s26 }
  0x1f   : > { %p2394_p7 = pneg %p2384_p6 }
  0x20   : > { %p1952_p13 = por %p1951_p12, %p1950_p11 }
  0x21   : > { %p1945_p9 = pnand %p1943_p8, %p2394_p7 }
  0x23   : > { %p1946_p10 = pneg %p1945_p9 }
  0x25   : > { %p1953_p0 = pnand %p1952_p13, %p1946_p10 }
  0x27   : > { %1956 = shalt.err (!%p1953_p0)
}
  0x28   : > { %s2787_s3 = sld [smem:[#allocation25_spill]]  ;;  %s1968_s11 = scalar_lea.vmem %s2380_s27, 16 }
  0x29   : > { %p1969_p2 = scmp.ne.s32.totalorder %s2380_s27, %s1968_s11  ;;  %s1975_s26 = scalar_lea.vmem %s2380_s27, 32 }
  0x2a   : > { %p1976_p9 = scmp.lt.s32.totalorder %s2380_s27, %s2380_s27  ;;  %p1977_p10 = scmp.lt.s32.totalorder %s1975_s26, %s1968_s11 }
  0x2b   : > { %p1971_p5 = pnand %p1969_p2, %p2394_p7 }
  0x2c   : > { %p1978_p11 = por %p1977_p10, %p1976_p9 }
  0x2d   : > { %p1972_p8 = pneg %p1971_p5 }
  0x2e   : > { %1793 = dma.hbm_to_vmem [thread:$0]  (!%p2384_p6), %s2787_s3, 16, %s410_s23, [#allocation7]  }
  0x2f   : > { %p1979_p12 = pnand %p1978_p11, %p1972_p8 }
  0x31   : > { %1982 = shalt.err (!%p1979_p12)
}
  0x32   : > { %s2788_s7 = sld [smem:[#allocation27_spill]]  ;;  %s1994_s23 = scalar_lea.vmem %s2388_s29, 16 }
  0x33   : > { %p1995_p13 = scmp.ne.s32.totalorder %s2388_s29, %s1994_s23  ;;  %s2001_s11 = scalar_lea.vmem %s2388_s29, 32 }
  0x34   : > { %p2002_p5 = scmp.lt.s32.totalorder %s2388_s29, %s2388_s29  ;;  %p2003_p8 = scmp.lt.s32.totalorder %s2001_s11, %s1994_s23 }
  0x35   : > { %p1997_p0 = pnand %p1995_p13, %p2394_p7 }
  0x36   : > { %p2004_p9 = por %p2003_p8, %p2002_p5 }
  0x37   : > { %p1998_p2 = pneg %p1997_p0 }
  0x38   : > { %1799 = dma.hbm_to_vmem [thread:$0]  (!%p2384_p6), %s2788_s7, 16, %s2380_s27, [#allocation10]  }
  0x39   : > { %p2005_p10 = pnand %p2004_p9, %p1998_p2 }
  0x3b   : > { %2008 = shalt.err (!%p2005_p10)
}
  0x3c   : > { %s2789_s10 = sld [smem:[#allocation29_spill]]  ;;  %s2020_s27 = scalar_lea.vmem %s487_s17, 512 }
  0x3d   : > { %p2021_p11 = scmp.ne.s32.totalorder %s487_s17, %s2020_s27  ;;  %p2028_p0 = scmp.lt.s32.totalorder %s487_s17, %s487_s17 }
  0x3e   : > { %p2029_p4 = scmp.lt.s32.totalorder %s2020_s27, %s2020_s27 }
  0x3f   : > { %p2023_p12 = pnand %p2021_p11, %p2394_p7 }
  0x40   : > { %p2030_p5 = por %p2029_p4, %p2028_p0 }
  0x41   : > { %p2024_p13 = pneg %p2023_p12 }
  0x42   : > { %1805 = dma.hbm_to_vmem [thread:$0]  (!%p2384_p6), %s2789_s10, 16, %s2388_s29, [#allocation13]  }
  0x43   : > { %p2031_p2 = pnand %p2030_p5, %p2024_p13 }
  0x45   : > { %2034 = shalt.err (!%p2031_p2)
}
  0x46   : > { %s2253_s15 = smov 64   ;;  %s2254_s28 = smov 4  }
  0x47   : > { %s2790_s13 = sld [smem:[#allocation32_spill]]  ;;  %s2255_s29 = smov [#allocation8]  }
  0x48   : > { %s423_s16 = sshll.u32 %s2255_s29, 4  ;;  %s2256_s26 = smov [#allocation11]   ;;  %s424_s16 = int_to_ptr.vmem [resolvable:$true] %s423_s16 }
  0x49   : > { %s448_s3 = sshll.u32 %s2256_s26, 4  ;;  %s2046_s7 = scalar_lea.vmem %s424_s16, 32  ;;  %s449_s3 = int_to_ptr.vmem [resolvable:$true] %s448_s3 }
  0x4a   : > { %p2047_p8 = scmp.ne.s32.totalorder %s424_s16, %s2046_s7  ;;  %p2054_p10 = scmp.lt.s32.totalorder %s424_s16, %s424_s16 }
  0x4b   : > { %p2055_p11 = scmp.lt.s32.totalorder %s2046_s7, %s2046_s7 }
  0x4c   : > { %p2049_p4 = pnand %p2047_p8, %p2394_p7 }
  0x4d   : > { %1811 = dma.hbm_to_vmem [thread:$0]  (!%p2384_p6), %s2790_s13, 512, %s487_s17, [#allocation16], %s2253_s15, %s2253_s15, %s2254_s28  }
  0x4e   : > { %p2050_p9 = pneg %p2049_p4  ;;  %p2056_p12 = por %p2055_p11, %p2054_p10 }
  0x50   : > { %p2057_p13 = pnand %p2056_p12, %p2050_p9 }
  0x52   : > { %2060 = shalt.err (!%p2057_p13)
}
  0x53   : > { %s2791_s5 = sld [smem:[#allocation26_spill]]  ;;  %s2072_s15 = scalar_lea.vmem %s449_s3, 16 }
  0x54   : > { %p2073_p0 = scmp.ne.s32.totalorder %s449_s3, %s2072_s15  ;;  %s2079_s28 = scalar_lea.vmem %s449_s3, 32 }
  0x55   : > { %p2080_p8 = scmp.lt.s32.totalorder %s449_s3, %s449_s3  ;;  %p2081_p4 = scmp.lt.s32.totalorder %s2079_s28, %s2072_s15 }
  0x56   : > { %p2075_p5 = pnand %p2073_p0, %p2394_p7 }
  0x57   : > { %p2082_p1 = por %p2081_p4, %p2080_p8 }
  0x58   : > { %p2076_p2 = pneg %p2075_p5 }
  0x59   : > { %1796 = dma.hbm_to_vmem [thread:$0]  (!%p2384_p6), %s2791_s5, 32, %s424_s16, [#allocation7]  }
  0x5a   : > { %p2083_p3 = pnand %p2082_p1, %p2076_p2 }
  0x5c   : > { %2086 = shalt.err (!%p2083_p3)
}
  0x5d   : > { %s2792_s8 = sld [smem:[#allocation28_spill]]  ;;  %s2257_s11 = smov [#allocation14]  }
  0x5e   : > { %s476_s29 = sshll.u32 %s2257_s11, 4  ;;  %s2258_s16 = smov [#allocation17]   ;;  %s477_s29 = int_to_ptr.vmem [resolvable:$true] %s476_s29 }
  0x5f   : > { %s500_s26 = sshll.u32 %s2258_s16, 4  ;;  %s2098_s27 = scalar_lea.vmem %s477_s29, 16  ;;  %s501_s26 = int_to_ptr.vmem [resolvable:$true] %s500_s26 }
  0x60   : > { %p2099_p9 = scmp.ne.s32.totalorder %s477_s29, %s2098_s27  ;;  %s2105_s17 = scalar_lea.vmem %s477_s29, 32 }
  0x61   : > { %p2106_p1 = scmp.lt.s32.totalorder %s477_s29, %s477_s29  ;;  %p2107_p3 = scmp.lt.s32.totalorder %s2105_s17, %s2098_s27 }
  0x62   : > { %p2101_p10 = pnand %p2099_p9, %p2394_p7 }
  0x63   : > { %1802 = dma.hbm_to_vmem [thread:$0]  (!%p2384_p6), %s2792_s8, 16, %s449_s3, [#allocation10]  }
  0x64   : > { %p2102_p11 = pneg %p2101_p10  ;;  %p2108_p12 = por %p2107_p3, %p2106_p1 }
  0x66   : > { %p2109_p13 = pnand %p2108_p12, %p2102_p11 }
  0x68   : > { %2112 = shalt.err (!%p2109_p13)
}
  0x69   : > { %s2793_s12 = sld [smem:[#allocation31_spill]]  ;;  %s2124_s28 = scalar_lea.vmem %s501_s26, 16 }
  0x6a   : > { %p2125_p0 = scmp.ne.s32.totalorder %s501_s26, %s2124_s28  ;;  %s2131_s7 = scalar_lea.vmem %s501_s26, 32 }
  0x6b   : > { %p2132_p8 = scmp.lt.s32.totalorder %s501_s26, %s501_s26  ;;  %p2133_p4 = scmp.lt.s32.totalorder %s2131_s7, %s2124_s28 }
  0x6c   : > { %p2127_p5 = pnand %p2125_p0, %p2394_p7 }
  0x6d   : > { %p2134_p9 = por %p2133_p4, %p2132_p8 }
  0x6e   : > { %p2128_p2 = pneg %p2127_p5 }
  0x6f   : > { %1808 = dma.hbm_to_vmem [thread:$0]  (!%p2384_p6), %s2793_s12, 16, %s477_s29, [#allocation13]  }
  0x70   : > { %p2135_p10 = pnand %p2134_p9, %p2128_p2 }
  0x72   : > { %2138 = shalt.err (!%p2135_p10)
}
  0x73   : > { %s2794_s14 = sld [smem:[#allocation33_spill]]  ;;  %s1585_s22 = sadd.s32 4294967294, %s2247_s21  }
  0x74   : > { %s2469_s30 = sadd.s32 1, %s2247_s21   ;;  %s42_s16 = sadd.s32 1, %s2243_s20 }
  0x75   : > { %s39_s29 = ssub.s32 %s2247_s21, %s2469_s30  ;;  %p49_p11 = scmp.ne.s32.totalorder %s2243_s20, %s2239_s19 }
  0x76   : > { %p40_p7 = scmp.eq.s32.totalorder %s39_s29, 0  ;;  %p50_p1 = scmp.eq.s32.totalorder %s2247_s21, 0 }
  0x77   : > { %p55_p3 = scmp.ne.s32.totalorder %s2239_s19, %s2235_s18  ;;  %p2796_p13 = scmp.eq.s32.totalorder %s2368_s24, 0 }
  0x78   : > { %s2480_s27 = scalar_select %p40_p7, %s2243_s20, %s42_s16  }
  0x79   : > { %1814 = dma.hbm_to_vmem [thread:$0]  (!%p2384_p6), %s2794_s14, 16, %s501_s26, [#allocation16]  }
  0x7a   : > { %p2482_p12 = por %p50_p1, %p49_p11  ;;  %p2488_p6 = por %p2796_p13, %p55_p3 }
  0x7b   : > { %p383_p0 = scmp.eq.s32.totalorder %s2368_s24, 1  ;;  %p389_p5 = scmp.eq.s32.totalorder %s1585_s22, 1 }
  0x7c   : > { %s2797_s26 = scalar_select %p2488_p6, 1, 0 }
  0x7d   : > { %p1831_p2 = scmp.lt.s32.totalorder %s2247_s21, 2  ;;  %s511_s3 = sand.u32 1, %s2243_s20  }
  0x7e   : > { %p2495_p8 = por %p383_p0, %p49_p11  ;;  %p2499_p4 = por %p389_p5, %p55_p3 }
  0x7f   : > { %s1596_s7 = sshll.u32 %s511_s3, 3  ;;  %s1597_s23 = sshll.u32 %s2247_s21, 7 }
  0x80   : > { %s2798_s15 = scalar_select %p2495_p8, 1, 0 }
  0x81   : > { %s2799_s28 = scalar_select %p2499_p4, 1, 0 }
  0x82   : > { %s2507_s16 = scalar_lea.hbm %s2752_s0, %s1597_s23  ;;  %s515_s22 = scalar_lea.vmem [#allocation3], %s1596_s7 }
  0x83   : > { %s522_s5 = sshll.u32 %s515_s22, 4  ;;  %p2511_p9 = pnand %p1831_p2, %p2482_p12  ;;  %s523_s5 = int_to_ptr.vmem [resolvable:$true] %s522_s5 }
  0x84   : > { %s512_s10 = scalar_lea.sflag [#allocation4], %s511_s3  ;;  %s2139_s12 = scalar_lea.hbm %s2507_s16, 128 }
  0x85   : > { %p2140_p10 = scmp.ne.s32.totalorder %s2507_s16, %s2139_s12  ;;  %p2141_p7 = pneg %p2511_p9 }
  0x86   : > { %s2144_s29 = scalar_lea.hbm %s2752_s0, 256  ;;  %p2145_p3 = scmp.lt.s32.totalorder %s2507_s16, %s2752_s0 }
  0x87   : > { %p2142_p11 = pnand %p2141_p7, %p2140_p10  ;;  %p2146_p12 = scmp.lt.s32.totalorder %s2144_s29, %s2139_s12 }
  0x89   : > { %p2143_p1 = pneg %p2142_p11  ;;  %p2147_p13 = por %p2146_p12, %p2145_p3 }
  0x8b   : > { %p2148_p0 = pnand %p2147_p13, %p2143_p1 }
  0x8d   : > { %2151 = shalt.err (!%p2148_p0)
}
  0x8e   : > { %s2152_s17 = scalar_lea.vmem %s523_s5, 128  ;;  %s2259_s3 = smov [#allocation3]  }
  0x8f   : > { %p2153_p5 = scmp.ne.s32.totalorder %s523_s5, %s2152_s17  ;;  %s2157_s13 = sshll.u32 %s2259_s3, 4  ;;  %s2158_s13 = int_to_ptr.vmem [resolvable:$false] %s2157_s13 }
  0x90   : > { %s2159_s14 = scalar_lea.vmem %s2158_s13, 256  ;;  %p2160_p10 = scmp.lt.s32.totalorder %s523_s5, %s2158_s13 }
  0x91   : > { %p2155_p2 = pnand %p2153_p5, %p2141_p7  ;;  %p2161_p11 = scmp.lt.s32.totalorder %s2159_s14, %s2152_s17 }
  0x93   : > { %p2156_p4 = pneg %p2155_p2  ;;  %p2162_p8 = por %p2161_p11, %p2160_p10 }
  0x95   : > { %p2163_p6 = pnand %p2162_p8, %p2156_p4 }
  0x97   : > { %2166 = shalt.err (!%p2163_p6)
}
  0x98   : > { %1818 = dma.hbm_to_vmem [thread:$0]  (!%p2511_p9), %s2507_s16, 128, %s523_s5, %s512_s10  }
  0x99   : > { %p2801_p1 = scmp.ne.s32.totalorder %s2784_s25, 0 }
  0x9a   : > { %s2532_s12 = sand.u32 (!%p2801_p1), 1, %s2239_s19   ;;  %p2802_p8 = scmp.ne.s32.totalorder (!%p2801_p1), %s2797_s26, 0 }
  0x9b   : > { %544 = sbr.rel (%p2801_p1) target bundleno = 2525 (0x9dd), region = 80  ;;  %s1599_s23 = sshll.u32 (!%p2801_p1), %s2532_s12, 3 }
  0x9c   : > { %s547_s13 = scalar_lea.sflag (!%p2801_p1), [#allocation4], %s2532_s12  ;;  %s550_s14 = scalar_lea.vmem (!%p2801_p1), [#allocation3], %s1599_s23 }
  0xa0   : > { %2210 = dma.done.wait (%p2802_p8), %s547_s13, 128  }
  0xa1   : > { %2212 = vsyncadd (%p2802_p8), %s547_s13, 4294967168  ;;  %p2803_p6 = scmp.eq.s32.totalorder %s2368_s24, 0 }
  0xa3   : > { %2214 = dma.done.wait (%p2803_p6), [#allocation7], 48   ;;  %p2804_p4 = pmov %p2803_p6 }
  0xa5   : > { %2216 = vsyncadd (%p2804_p4), [#allocation7], 4294967248  ;;  %p2805_p9 = pmov %p2804_p4 }
  0xa6   : > { %p2806_p7 = pmov %p2804_p4 }
  0xa7   : > { %2218 = dma.done.wait (%p2805_p9), [#allocation10], 32  }
  0xa8   : > { %2220 = vsyncadd (%p2806_p7), [#allocation10], 4294967264  ;;  %p2807_p3 = pmov %p2804_p4 }
  0xaa   : > { %2222 = dma.done.wait (%p2807_p3), [#allocation13], 32   ;;  %p2808_p12 = pmov %p2807_p3 }
  0xab   : > { %p2809_p13 = pmov %p2807_p3 }
  0xac   : > { %2224 = vsyncadd (%p2808_p12), [#allocation13], 4294967264 }
  0xad   : > { %2226 = dma.done.wait (%p2809_p13), [#allocation16], 528   ;;  %p2810_p0 = pmov %p2807_p3 }
  0xae   : > { %v2558_v0 = vld [vmem:[%s550_s14] sm:$0xff]  ;;  %vm646_vm0 = vcmask 523264   ;;  %v2260_v7 = vmov 0   ;;  %v1610_v16 = vld [vmem:[#allocation6] ss:$0 sm:$0xff]  ;;  %v674_v20 = vlaneseq  ;;  %s2261_s10 = smov 96  }
  0xaf   : > { %2228 = vsyncadd (%p2810_p0), [#allocation16], 4294966768  ;;  %v645_v1 = vmul.f32 %v2558_v0, %v2558_v0  ;;  %v1889_v3 = vld [vmem:[%s2756_s4 + $0x34] ss:$8 sps:$4 sm:$0xff]   ;;  %v1891_v4 = vld [vmem:[%s2756_s4 + $0x30] ss:$8 sps:$4 sm:$0xff]   ;;  %759 = vmatprep.mubr.bf16.mxu0 %v2260_v7 }
  0xb0   : > { %v1892_v5 = vld [vmem:[%s2756_s4 + $0x24] ss:$8 sps:$4 sm:$0xff]   ;;  %735 = vmatprep.subr.bf16.mxu0 %v1889_v3  ;;  %v1894_v6 = vld [vmem:[%s2756_s4 + $0x20] ss:$8 sps:$4 sm:$0xff]   ;;  %v1895_v8 = vld [vmem:[%s2756_s4 + $0x14] ss:$8 sps:$4 sm:$0xff]  }
  0xb1   : > { %v647_v2 = vsel %vm646_vm0, %v645_v1, 0.0  ;;  %736 = vmatpush1.bf16.msra.mxu0 %v1891_v4  ;;  %v1897_v9 = vld [vmem:[%s2756_s4 + $0x10] ss:$8 sps:$4 sm:$0xff]   ;;  %v1898_v10 = vld [vmem:[%s2756_s4 + $0x4] ss:$8 sps:$4 sm:$0xff]   ;;  %v675_v21 = vshrl.u32 %v674_v20, 7 }
  0xb2   : > { %648 = vadd.xlane.f32.xlu0 %v647_v2  ;;  %737 = vmatprep.subr.bf16.mxu0 %v1892_v5  ;;  %v1900_v11 = vld [vmem:[%s2756_s4] ss:$8 sps:$4 sm:$0xff]   ;;  %v672_v23 = vld [vmem:[#allocation8] sm:$0x3]  ;;  %s2262_s25 = smov 32   ;;  %s2263_s26 = smov 64  }
  0xb3   : > { %v676_v22 = vsub.s32 0, %v675_v21  ;;  %p636_p5 = scmp.lt.s32.totalorder %s2368_s24, 1  ;;  %v2264_v34 = vmov 0.0   ;;  %vm2265_vm1 = vmmov 0   ;;  %v680_v43 = vsub.s32 1, %v675_v21  ;;  %s2811_s3 = sld [smem:[#allocation30_spill]] }
  0xb4   : > { %1682 = vmatprep.subr.bf16.mxu1 %v2264_v34  ;;  %1684 = vmatprep.mubr.msk.bf16.mxu1 %vm2265_vm1, %v2264_v34  ;;  %vm807_vm2 = vcmask 261120   ;;  %vm878_vm3 = vcmask 1043456   ;;  %vm862_vm4 = vcmask 64512   ;;  %vm1044_vm5 = vcmask 523520   ;;  %s1651_s17 = sshll.u32 %s2368_s24, 7  ;;  %p2813_p10 = scmp.ne.s32.totalorder %s2798_s15, 0 }
  0xb5   : > { %738 = vmatpush1.bf16.msra.mxu0 %v1894_v6  ;;  %v677_v24 = vrot.slane %v672_v23, %v676_v22  ;;  %s2593_s16 = scalar_select %p636_p5, %s2368_s24, 1  ;;  %v681_v47 = vrot.slane %v672_v23, %v680_v43 }
  0xb6   : > { %739 = vmatprep.subr.bf16.mxu0 %v1895_v8  ;;  %s1405_s24 = scalar_lea.sflag [#allocation5], %s2532_s12 }
  0xb7   : > { %s1609_s11 = sshll.u32 %s2593_s16, 3  ;;  %s642_s13 = scalar_lea.vmem %s2754_s2, %s2593_s16 }
  0xb8   : > { %s639_s22 = scalar_lea.vmem %s2753_s1, %s1609_s11  ;;  %v1621_v61 = vld [vmem:[%s642_s13] ss:$0 sm:$0xff]  ;;  %s635_s13 = scalar_lea.vmem [#allocation18], %s1599_s23 }
  0xb9   : > { %740 = vmatpush1.bf16.msra.mxu0 %v1897_v9  ;;  %v768_v30 = vld [vmem:[%s639_s22] sm:$0xff]  ;;  %s1418_s14 = sshll.u32 %s635_s13, 4  ;;  %s2266_s16 = smov [#allocation18]   ;;  %s2710_s14 = int_to_ptr.vmem [resolvable:$true] %s1418_s14 }
  0xba   : > { %741 = vmatprep.subr.bf16.mxu0 %v1898_v10  ;;  %s2167_s23 = scalar_lea.vmem %s2710_s14, 128  ;;  %s2171_s11 = sshll.u32 %s2266_s16, 4  ;;  %s2172_s11 = int_to_ptr.vmem [resolvable:$false] %s2171_s11 }
  0xbb   : > { %p2168_p2 = scmp.ne.s32.totalorder %s2710_s14, %s2167_s23  ;;  %s2173_s29 = scalar_lea.vmem %s2172_s11, 256 }
  0xbc   : > { %p2174_p8 = scmp.lt.s32.totalorder %s2710_s14, %s2172_s11  ;;  %p2175_p6 = scmp.lt.s32.totalorder %s2173_s29, %s2167_s23 }
  0xbd   : > { %742 = vmatpush1.bf16.msra.mxu0 %v1900_v11  ;;  %p2169_p11 = pnand %p2168_p2, %p2813_p10 }
  0xbe   : > { %1694 = vmatprep.subr.bf16.mxu0 %v2264_v34  ;;  %p2176_p4 = por %p2175_p6, %p2174_p8 }
  0xbf   : > { %p2170_p1 = pneg %p2169_p11 }
  0xc1   : > { %p2177_p9 = pnand %p2176_p4, %p2170_p1 }
 0x13b   : > { %v649_v12 = vpop.xlane.xlu0 %648 }
 0x13c   : > { %v651_v13 = vmul.f32 0.015625, %v649_v12 }
 0x13e   : > { %v653_v14 = vadd.f32 1e-06, %v651_v13 }
 0x140   : > { %1917 = vrsqrt.f32 %v653_v14 }
 0x14d   : > { %v1918_v15 = vpop.eup %1917 }
 0x14e   : > { %v655_v17 = vmul.f32 %v1918_v15, %v2558_v0 }
 0x150   : > { %v662_v18 = vmul.f32 %v1610_v16, %v655_v17 }
 0x152   : > { %v663_v19 = vpack.c.bf16 %v662_v18, %v662_v18 }
 0x154   : > { %1619 = vmatmul.mubr.msk.bf16.vlgmr.msra.gmra.mxu0 %vm646_vm0, %v663_v19 }
 0x155   : > { %1696 = vmatprep.mubr.msk.bf16.mxu0 %vm2265_vm1, %v2264_v34 }
 0x214   : > { %v761_v25 = vpop.f32.mrf.mxu0 }
 0x215   : > { %v762_v26 = vadd.f32 %v761_v25, %v677_v24 }
 0x216   : > { %v763_v27 = vpop.f32.mrf.mxu0 }
 0x217   : > { %780 = vrot.lane.b32.xlu1 %v762_v26, %s2261_s10  ;;  %776 = vrot.lane.b32.xlu0 %v762_v26, %s2262_s25  ;;  %v769_v38 = vmul.f32 %v768_v30, %v762_v26  ;;  %v764_v51 = vadd.f32 %v763_v27, %v681_v47 }
 0x218   : > { %v765_v28 = vpop.f32.mrf.mxu0 }
 0x219   : > { %v806_v54 = vpack.c.bf16 %v764_v51, %v764_v51 }
 0x21a   : > { %v766_v29 = vpop.f32.mrf.mxu0 }
 0x21b   : > { %789 = vrot.lane.b32.xlu1 %v762_v26, %s2263_s26  ;;  %v880_v56 = vsel %vm878_vm3, %v806_v54, 0 }
 0x289   : > { %v781_v31 = vpop.permute.xlu1 %780  ;;  %v777_v32 = vpop.permute.xlu0 %776 }
 0x28a   : > { %v779_v33 = vmul.f32 %v777_v32, %v768_v30  ;;  %v783_v35 = vmul.f32 %v781_v31, %v768_v30  ;;  %v1901_v32 = vld [vmem:[%s2758_s6 + $0x18] sm:$0xff]  }
 0x28c   : > { %799 = vrot.lane.b32.xlu1 %v779_v33, %s2262_s25 }
 0x28d   : > { %v790_v36 = vpop.permute.xlu1 %789 }
 0x28e   : > { %v792_v37 = vmul.f32 %v790_v36, %v768_v30 }
 0x290   : > { %785 = vrot.lane.b32.xlu1 %v783_v35, %s2262_s25 }
 0x294   : > { %794 = vrot.lane.b32.xlu1 %v792_v37, %s2261_s10 }
 0x298   : > { %771 = vrot.lane.b32.xlu1 %v769_v38, %s2261_s10 }
 0x2fe   : > { %v800_v39 = vpop.permute.xlu1 %799 }
 0x2ff   : > { %v802_v40 = vadd.f32 %v800_v39, %v783_v35  ;;  %v1903_v39 = vld [vmem:[%s2758_s6 + $0x8] sm:$0xff]  }
 0x301   : > { %v924_v41 = vpack.c.bf16 %v802_v40, %v802_v40  ;;  %v1904_v40 = vld [vmem:[%s2758_s6] sm:$0xff]  }
 0x302   : > { %v786_v42 = vpop.permute.xlu1 %785 }
 0x303   : > { %v788_v44 = vadd.f32 %v786_v42, %v779_v33  ;;  %929 = vrot.lane.b32.xlu1 %v924_v41, %s2261_s10  ;;  %v1902_v33 = vld [vmem:[%s2758_s6 + $0x10] sm:$0xff]  }
 0x305   : > { %v923_v45 = vpack.c.bf16 %v788_v44, %v788_v44 }
 0x306   : > { %v795_v46 = vpop.permute.xlu1 %794 }
 0x307   : > { %v797_v48 = vsub.f32 %v792_v37, %v795_v46  ;;  %926 = vrot.lane.b32.xlu0 %v923_v45, %s2261_s10 }
 0x309   : > { %v805_v49 = vpack.c.bf16 %v797_v48, %v797_v48  ;;  %v1625_v48 = vld [vmem:[#allocation9] ss:$0 sm:$0xff] }
 0x30a   : > { %v772_v50 = vpop.permute.xlu1 %771 }
 0x30b   : > { %v812_v52 = vsel %vm807_vm2, %v805_v49, 0  ;;  %v774_v53 = vsub.f32 %v769_v38, %v772_v50 }
 0x30c   : > { %1683 = vmatpush3.bf16.xpose.msra.mxu1 %v812_v52 }
 0x30d   : > { %1688 = vmatprep.subr.bf16.mxu1 %v2264_v34  ;;  %v804_v55 = vpack.c.bf16 %v774_v53, %v774_v53 }
 0x313   : > { %1685 = vmatmul.mubr.msk.bf16.vlgmr.msra.gmra.mxu1 %vm807_vm2, %v804_v55 }
 0x314   : > { %1689 = vmatpush3.bf16.msra.mxu1 %v880_v56  ;;  %1690 = vmatprep.mubr.msk.bf16.mxu1 %vm2265_vm1, %v2264_v34 }
 0x315   : > { %1700 = vmatprep.subr.bf16.mxu1 %v2264_v34 }
 0x375   : > { %v930_v57 = vpop.permute.xlu1 %929 }
 0x376   : > { %v935_v58 = vsel %vm807_vm2, %v930_v57, 0  ;;  %v1905_v57 = vld [vmem:[%s2761_s9 + $0x18] sm:$0xff]  }
 0x377   : > { %1695 = vmatpush3.bf16.xpose.msra.mxu0 %v935_v58  ;;  %v1906_v58 = vld [vmem:[%s2811_s3 + $0x18] sm:$0xff]  }
 0x378   : > { %1706 = vmatprep.subr.bf16.mxu0 %v2264_v34 }
 0x379   : > { %v927_v59 = vpop.permute.xlu0 %926 }
 0x37e   : > { %1697 = vmatmul.mubr.msk.bf16.vlgmr.msra.gmra.mxu0 %vm807_vm2, %v927_v59  ;;  %v1908_v59 = vld [vmem:[%s2811_s3 + $0x10] sm:$0xff]  }
 0x37f   : > { %1714 = vmatprep.mubr.msk.bf16.mxu0 %vm2265_vm1, %v2264_v34  ;;  %1707 = vmatpush3.bf16.msra.mxu0 %v1901_v32 }
 0x380   : > { %1708 = vmatprep.subr.bf16.mxu0 %v2264_v34 }
 0x383   : > { %1709 = vmatpush3.bf16.msra.mxu0 %v1902_v33 }
 0x384   : > { %1710 = vmatprep.subr.bf16.mxu0 %v2264_v34 }
 0x387   : > { %1711 = vmatpush3.bf16.msra.mxu0 %v1903_v39 }
 0x388   : > { %1712 = vmatprep.subr.bf16.mxu0 %v2264_v34 }
 0x38b   : > { %1713 = vmatpush3.bf16.msra.mxu0 %v1904_v40 }
 0x38c   : > { %1730 = vmatprep.subr.bf16.mxu0 %v2264_v34 }
 0x3d3   : > { %v848_v60 = vpop.f32.mrf.mxu1 }
 0x3d4   : > { %v854_v62 = vmul.f32 0.17677669, %v848_v60  ;;  %v1909_v60 = vld [vmem:[%s2761_s9 + $0x8] sm:$0xff]  }
 0x3d5   : > { %v1686_v63 = vpop.f32.mrf.mxu1 }
 0x3d6   : > { %v861_v1 = vadd.f32 %v1621_v61, %v854_v62  ;;  %v1911_v62 = vld [vmem:[%s2761_s9] sm:$0xff]  }
 0x3d7   : > { %v851_v2 = vpop.f32.mrf.mxu1  ;;  %v1912_v63 = vld [vmem:[%s2811_s3] sm:$0xff]  }
 0x3d8   : > { %v863_v3 = vsel %vm862_vm4, %v861_v1, -inf }
 0x3d9   : > { %864 = vmax.xlane.f32.xlu1 %v863_v3  ;;  %v1687_v4 = vpop.f32.mrf.mxu1 }
 0x43e   : > { %v971_v5 = vpop.f32.mrf.mxu0 }
 0x43f   : > { %v977_v6 = vmul.f32 0.17677669, %v971_v5  ;;  %v1631_v5 = vld [vmem:[#allocation11] ss:$0 sm:$0xff] }
 0x440   : > { %v1698_v7 = vpop.f32.mrf.mxu0 }
 0x441   : > { %v978_v8 = vadd.f32 %v1621_v61, %v977_v6  ;;  %v1910_v61 = vld [vmem:[%s2811_s3 + $0x8] sm:$0xff]  }
 0x442   : > { %v974_v9 = vpop.f32.mrf.mxu0 }
 0x443   : > { %v979_v10 = vsel %vm862_vm4, %v978_v8, -inf  ;;  %v1913_v9 = vld [vmem:[#allocation15 + $0x18] sm:$0xff]  }
 0x444   : > { %980 = vmax.xlane.f32.xlu0 %v979_v10  ;;  %v1699_v11 = vpop.f32.mrf.mxu0  ;;  %v1914_v10 = vld [vmem:[#allocation15 + $0x10] sm:$0xff]  }
 0x445   : > { %v1915_v11 = vld [vmem:[#allocation15 + $0x8] sm:$0xff]  }
 0x462   : > { %v865_v12 = vpop.xlane.xlu1 %864 }
 0x463   : > { %v866_v13 = vsub.f32 %v861_v1, %v865_v12  ;;  %v1916_v12 = vld [vmem:[#allocation15] sm:$0xff]  }
 0x465   : > { %v867_v14 = vmul.f32 1.442695, %v866_v13  ;;  %v1632_v13 = vld [vmem:[#allocation12] ss:$0 sm:$0xff] }
 0x467   : > { %1919 = vpow2.f32 %v867_v14 }
 0x474   : > { %v1920_v15 = vpop.eup %1919 }
 0x475   : > { %v869_v16 = vsel %vm862_vm4, %v1920_v15, 0.0 }
 0x476   : > { %870 = vadd.xlane.f32.xlu0 %v869_v16 }
 0x48c   : > { %992 = vrot.lane.b32.xlu0 %v806_v54, %s2261_s10  ;;  %s2812_s10 = sld [smem:[#allocation34_spill]] }
 0x492   : > { %s2708_s26 = scalar_lea.hbm %s2812_s10, %s1651_s17 }
 0x4cd   : > { %v981_v17 = vpop.xlane.xlu0 %980 }
 0x4ce   : > { %v982_v18 = vsub.f32 %v978_v8, %v981_v17 }
 0x4d0   : > { %v983_v19 = vmul.f32 1.442695, %v982_v18 }
 0x4d2   : > { %1921 = vpow2.f32 %v983_v19 }
 0x4df   : > { %v1922_v20 = vpop.eup %1921 }
 0x4e0   : > { %v985_v21 = vsel %vm862_vm4, %v1922_v20, 0.0 }
 0x4e1   : > { %986 = vadd.xlane.f32.xlu1 %v985_v21 }
 0x4ff   : > { %v871_v22 = vpop.xlane.xlu0 %870 }
 0x500   : > { %1923 = vrcp.f32 %v871_v22 }
 0x503   : > { %v993_v25 = vpop.permute.xlu0 %992 }
 0x504   : > { %v998_v27 = vsel %vm878_vm3, %v993_v25, 0 }
 0x50d   : > { %v1924_v23 = vpop.eup %1923 }
 0x50e   : > { %v873_v24 = vmul.f32 %v1924_v23, %v1920_v15 }
 0x510   : > { %v874_v26 = vpack.c.bf16 %v873_v24, %v873_v24 }
 0x512   : > { %1691 = vmatmul.mubr.msk.bf16.vlgmr.msra.gmra.mxu1 %vm862_vm4, %v874_v26 }
 0x513   : > { %1701 = vmatpush3.bf16.msra.mxu1 %v998_v27  ;;  %1702 = vmatprep.mubr.msk.bf16.mxu1 %vm2265_vm1, %v2264_v34 }
 0x514   : > { %1718 = vmatprep.subr.bf16.mxu1 %v2264_v34 }
 0x56a   : > { %v987_v28 = vpop.xlane.xlu1 %986 }
 0x56b   : > { %1925 = vrcp.f32 %v987_v28 }
 0x578   : > { %v1926_v29 = vpop.eup %1925 }
 0x579   : > { %v989_v30 = vmul.f32 %v1926_v29, %v1922_v20  ;;  %v1638_v29 = vld [vmem:[#allocation14] ss:$0 sm:$0xff] }
 0x57b   : > { %v990_v31 = vpack.c.bf16 %v989_v30, %v989_v30 }
 0x57d   : > { %1703 = vmatmul.mubr.msk.bf16.vlgmr.msra.gmra.mxu1 %vm862_vm4, %v990_v31 }
 0x57e   : > { %1726 = vmatprep.mubr.msk.bf16.mxu1 %vm2265_vm1, %v2264_v34  ;;  %1719 = vmatpush3.bf16.msra.mxu1 %v1905_v57 }
 0x57f   : > { %1720 = vmatprep.subr.bf16.mxu1 %v2264_v34 }
 0x5d2   : > { %v916_v35 = vpop.f32.mrf.mxu1 }
 0x5d3   : > { %922 = vst.msk [vmem:[#allocation2] sm:$0xff] %vm807_vm2, %v916_v35 }
 0x5d4   : > { %v1692_v36 = vpop.f32.mrf.mxu1 }
 0x5d5   : > { %v1644_v36 = vld [vmem:[#allocation17] ss:$0 sm:$0xff] }
 0x5d6   : > { %v919_v37 = vpop.f32.mrf.mxu1 }
 0x5d8   : > { %v1693_v38 = vpop.f32.mrf.mxu1 }
 0x63d   : > { %v1034_v41 = vpop.f32.mrf.mxu1 }
 0x63e   : > { %1041 = vrot.lane.b32.xlu1 %v1034_v41, %s2262_s25 }
 0x63f   : > { %v1704_v42 = vpop.f32.mrf.mxu1 }
 0x641   : > { %v1037_v43 = vpop.f32.mrf.mxu1 }
 0x643   : > { %v1705_v44 = vpop.f32.mrf.mxu1 }
 0x6b0   : > { %v1042_v45 = vpop.permute.xlu1 %1041 }
 0x6b1   : > { %1045 = vst.msk [vmem:[#allocation2] sm:$0xff] %vm1044_vm5, %v1042_v45 }
 0x6b8   : > { %v1046_v46 = vld [vmem:[#allocation2] sm:$0xff] }
 0x6b9   : > { %v1047_v47 = vpack.c.bf16 %v1046_v46, %v1046_v46 }
 0x6bb   : > { %1715 = vmatmul.mubr.msk.bf16.vlgmr.msra.gmra.mxu0 %vm646_vm0, %v1047_v47 }
 0x6bc   : > { %1738 = vmatprep.mubr.msk.bf16.mxu0 %vm2265_vm1, %v2264_v34  ;;  %1731 = vmatpush3.bf16.msra.mxu0 %v1906_v58 }
 0x6bd   : > { %1732 = vmatprep.subr.bf16.mxu0 %v2264_v34 }
 0x6c0   : > { %1733 = vmatpush3.bf16.msra.mxu0 %v1908_v59 }
 0x6c1   : > { %1734 = vmatprep.subr.bf16.mxu0 %v2264_v34 }
 0x6c4   : > { %1735 = vmatpush3.bf16.msra.mxu0 %v1910_v61 }
 0x6c5   : > { %1736 = vmatprep.subr.bf16.mxu0 %v2264_v34 }
 0x6c8   : > { %1737 = vmatpush3.bf16.msra.mxu0 %v1912_v63 }
 0x77b   : > { %v1124_v49 = vpop.f32.mrf.mxu0 }
 0x77c   : > { %v1125_v50 = vadd.f32 %v1625_v48, %v1124_v49 }
 0x77d   : > { %v1716_v51 = vpop.f32.mrf.mxu0 }
 0x77e   : > { %v1130_v52 = vadd.f32 %v1125_v50, %v2558_v0  ;;  %v1907_v0 = vld [vmem:[%s2761_s9 + $0x10] sm:$0xff]  }
 0x77f   : > { %v1127_v53 = vpop.f32.mrf.mxu0  ;;  %1721 = vmatpush3.bf16.msra.mxu1 %v1907_v0 }
 0x780   : > { %v1131_v54 = vmul.f32 %v1130_v52, %v1130_v52  ;;  %1722 = vmatprep.subr.bf16.mxu1 %v2264_v34 }
 0x781   : > { %v1717_v55 = vpop.f32.mrf.mxu0 }
 0x782   : > { %v1132_v56 = vsel %vm646_vm0, %v1131_v54, 0.0 }
 0x783   : > { %1133 = vadd.xlane.f32.xlu1 %v1132_v56  ;;  %1723 = vmatpush3.bf16.msra.mxu1 %v1909_v60 }
 0x784   : > { %1724 = vmatprep.subr.bf16.mxu1 %v2264_v34 }
 0x787   : > { %1725 = vmatpush3.bf16.msra.mxu1 %v1911_v62 }
 0x788   : > { %1742 = vmatprep.subr.bf16.mxu1 %v2264_v34 }
 0x80c   : > { %v1134_v1 = vpop.xlane.xlu1 %1133 }
 0x80d   : > { %v1135_v2 = vmul.f32 0.015625, %v1134_v1 }
 0x80f   : > { %v1137_v3 = vadd.f32 1e-06, %v1135_v2 }
 0x811   : > { %1927 = vrsqrt.f32 %v1137_v3 }
 0x81e   : > { %v1928_v4 = vpop.eup %1927 }
 0x81f   : > { %v1139_v6 = vmul.f32 %v1928_v4, %v1130_v52 }
 0x821   : > { %v1146_v7 = vmul.f32 %v1631_v5, %v1139_v6 }
 0x823   : > { %v1147_v8 = vpack.c.bf16 %v1146_v7, %v1146_v7 }
 0x825   : > { %1727 = vmatmul.mubr.msk.bf16.vlgmr.msra.gmra.mxu1 %vm646_vm0, %v1147_v8  ;;  %1739 = vmatmul.mubr.msk.bf16.vlgmr.msra.gmra.mxu0 %vm646_vm0, %v1147_v8 }
 0x826   : > { %1750 = vmatprep.mubr.msk.bf16.mxu1 %vm2265_vm1, %v2264_v34  ;;  %1743 = vmatpush3.bf16.msra.mxu1 %v1913_v9 }
 0x827   : > { %1744 = vmatprep.subr.bf16.mxu1 %v2264_v34 }
 0x82a   : > { %1745 = vmatpush3.bf16.msra.mxu1 %v1914_v10 }
 0x82b   : > { %1746 = vmatprep.subr.bf16.mxu1 %v2264_v34 }
 0x82e   : > { %1747 = vmatpush3.bf16.msra.mxu1 %v1915_v11 }
 0x82f   : > { %1748 = vmatprep.subr.bf16.mxu1 %v2264_v34 }
 0x832   : > { %1749 = vmatpush3.bf16.msra.mxu1 %v1916_v12 }
 0x8e5   : > { %v1224_v14 = vpop.f32.mrf.mxu1  ;;  %v1303_v15 = vpop.f32.mrf.mxu0 }
 0x8e6   : > { %v1225_v16 = vadd.f32 %v1632_v13, %v1224_v14  ;;  %v1304_v31 = vadd.f32 %v1638_v29, %v1303_v15 }
 0x8e7   : > { %v1728_v17 = vpop.f32.mrf.mxu1  ;;  %v1740_v18 = vpop.f32.mrf.mxu0 }
 0x8e8   : > { %v1309_v19 = vmul.f32 %v1225_v16, %v1225_v16 }
 0x8e9   : > { %v1227_v20 = vpop.f32.mrf.mxu1  ;;  %v1306_v21 = vpop.f32.mrf.mxu0 }
 0x8ea   : > { %v1310_v22 = vmul.f32 %v1309_v19, %v1225_v16 }
 0x8eb   : > { %v1729_v23 = vpop.f32.mrf.mxu1  ;;  %v1741_v24 = vpop.f32.mrf.mxu0 }
 0x8ec   : > { %v1311_v25 = vmul.f32 0.044715, %v1310_v22 }
 0x8ee   : > { %v1312_v26 = vadd.f32 %v1311_v25, %v1225_v16 }
 0x8f0   : > { %v1313_v27 = vmul.f32 0.7978846, %v1312_v26 }
 0x8f2   : > { %1929 = vtanh.f32 %v1313_v27 }
 0x8ff   : > { %v1930_v34 = vpop.eup %1929 }
 0x900   : > { %v1315_v28 = vadd.f32 1.0, %v1930_v34 }
 0x902   : > { %v1316_v30 = vmul.f32 0.5, %v1315_v28 }
 0x904   : > { %v1317_v32 = vmul.f32 %v1316_v30, %v1225_v16 }
 0x906   : > { %v1318_v33 = vmul.f32 %v1317_v32, %v1304_v31 }
 0x908   : > { %v1319_v35 = vpack.c.bf16 %v1318_v33, %v1318_v33 }
 0x90a   : > { %1751 = vmatmul.mubr.msk.bf16.vlgmr.msra.gmra.mxu1 %vm646_vm0, %v1319_v35 }
 0x9ca   : > { %v1396_v37 = vpop.f32.mrf.mxu1 }
 0x9cb   : > { %v1397_v38 = vadd.f32 %v1644_v36, %v1396_v37 }
 0x9cc   : > { %v1752_v39 = vpop.f32.mrf.mxu1 }
 0x9cd   : > { %v1402_v40 = vadd.f32 %v1397_v38, %v1146_v7 }
 0x9ce   : > { %v1399_v41 = vpop.f32.mrf.mxu1 }
 0x9cf   : > { %1403 = vst.msk [vmem:[%s635_s13] sm:$0xff] %vm646_vm0, %v1402_v40 }
 0x9d0   : > { %v1753_v42 = vpop.f32.mrf.mxu1 }
 0x9d1   : > { %2180 = shalt.err (!%p2177_p9)
}
 0x9d2   : > { %s2181_s25 = scalar_lea.hbm %s2708_s26, 128  ;;  %s2185_s22 = scalar_lea.hbm %s2812_s10, 256 }
 0x9d3   : > { %p2182_p7 = scmp.ne.s32.totalorder %s2708_s26, %s2181_s25  ;;  %p2186_p13 = scmp.lt.s32.totalorder %s2708_s26, %s2812_s10 }
 0x9d4   : > { %p2187_p0 = scmp.lt.s32.totalorder %s2185_s22, %s2181_s25 }
 0x9d5   : > { %p2183_p3 = pnand %p2182_p7, %p2813_p10 }
 0x9d6   : > { %p2188_p5 = por %p2187_p0, %p2186_p13 }
 0x9d7   : > { %p2184_p12 = pneg %p2183_p3 }
 0x9d9   : > { %p2189_p2 = pnand %p2188_p5, %p2184_p12 }
 0x9db   : > { %2192 = shalt.err (!%p2189_p2)
}
 0x9dc   : > { %1788 = dma.vmem_to_hbm [thread:$0]  (%p2813_p10), %s2710_s14, 128, %s2708_s26, %s1405_s24  }
 0x9dd PF: > { %s1430_s5 = sand.u32 1, %s2235_s18   ;;  %p2814_p11 = scmp.ne.s32.totalorder %s2799_s28, 0 }
 0x9de   : > { %p2815_p1 = scmp.ge.s32.totalorder %s2247_s21, 2  ;;  %s1431_s8 = scalar_lea.sflag [#allocation5], %s1430_s5 }
 0x9e0   : > { %p1820_p8 = pnand %p2815_p1, %p2814_p11 }
 0x9e2   : > { %p1821_p6 = pneg %p1820_p8 }
 0x9e4   : > { %2230 = dma.done.wait (%p1821_p6), %s1431_s8, 128  }
 0x9e5   : > { %2232 = vsyncadd (%p1821_p6), %s1431_s8, 4294967168  ;;  %p32_p4 = scmp.ge.s32.totalorder %s2469_s30, 4   ;;  %s2816_s18 = smov %s2239_s19 }
 0x9e6   : > { %s2817_s19 = smov %s2243_s20  ;;  %s2818_s20 = smov %s2480_s27 }
 0x9e7   : > { %s2819_s21 = smov %s2469_s30  ;;  %34 = sbr.rel (!%p32_p4) target bundleno = 20 (0x14), region = 163 }
 0x9ec   :  { %1436 = vsyncpa [#allocation4], 1 }
 0x9ed   :  { %1438 = vsyncpa [#allocation4 + $0x1], 1 }
 0x9ee   :  { %1439 = vsyncpa [#allocation7], 1 }
 0x9ef   :  { %1440 = vsyncpa [#allocation10], 1 }
 0x9f0   :  { %1441 = vsyncpa [#allocation13], 1 }
 0x9f1   :  { %1442 = vsyncpa [#allocation16], 1 }
 0x9f2   :  { %1443 = vsyncpa [#allocation5], 1 }
 0x9f3   :  { %1445 = vsyncpa [#allocation5 + $0x1], 1 }

</bundles_post_ra>
